<compile_context>
chip_gen: v7x
topology: tpu7x:2x2x1
jax: 0.10.0
libtpu: 0.0.40
codegen_flags: <defaults>
</compile_context>

<pallas_src>
import functools

import jax
import jax.numpy as jnp
from jax.experimental import pallas as pl
from jax.experimental.pallas import tpu as pltpu

_LANE = 128      # internal hidden dims padded to multiples of this (once, in __init__)
_ROW_ALIGN = 16  # row-tile alignment (safe sublane packing for f32 and bf16)


def _round_up(n, m):
    return ((n + m - 1) // m) * m


def _fused_mlp_kernel(*refs, num_layers, compute_dtype):
    """refs = (x, w_0..w_{L-1}, b_0..b_{L-1}, out).

    The whole layer chain runs on one (tm, features) row tile: intermediate
    activations never leave VMEM/vregs.  Weights/biases use constant
    index_maps, so the pipeline keeps them VMEM-resident across grid steps
    (one HBM fetch per kernel invocation, not per row tile).
    """
    x_ref = refs[0]
    w_refs = refs[1:1 + num_layers]
    b_refs = refs[1 + num_layers:1 + 2 * num_layers]
    o_ref = refs[-1]

    h = x_ref[...]
    for li in range(num_layers):
        y = jnp.dot(h.astype(compute_dtype), w_refs[li][...],
                    preferred_element_type=jnp.float32)   # MXU, f32 accumulation
        y = y + b_refs[li][...]                            # f32 bias (1, d) broadcast
        if li < num_layers - 1:
            y = jnp.maximum(y, 0.0)                        # ReLU on the VPU
        h = y
    o_ref[...] = h.astype(o_ref.dtype)


def _vmem_limit_bytes(ws, bs, tm, din, dout, io_itemsize):
    """Generation-aware VMEM budget for the fused-resident design."""
    # Resident weights/biases are double-buffered by the BlockSpec pipeline
    # even with a constant index_map, hence the factor 2.  (If VMEM gets tight
    # on v7x, pl.BlockSpec(..., pipeline_mode=pl.Buffered(1)) would halve it.)
    resident = sum(int(w.size) * w.dtype.itemsize for w in ws)
    resident += sum(int(b.size) * b.dtype.itemsize for b in bs)
    widest = max(int(w.shape[1]) for w in ws)
    tiles = tm * (din + dout) * io_itemsize     # x tile + out tile
    act = tm * widest * 4                       # f32 intermediate activation
    needed = 2 * resident + 2 * tiles + 2 * act + (4 << 20)   # + headroom
    try:
        phys = pltpu.get_tpu_info().vmem_capacity_bytes
    except Exception:
        phys = 64 << 20                         # conservative (v7x per-core VMEM)
    cap = (phys * 3) // 4                       # ~96 MiB v5e/v6e, ~48 MiB v7x
    # TODO(synk): when resident weights exceed ~24 MiB (v7x) / ~48 MiB
    # (v5e/v6e), switch to a K/N-tiled grid with an f32 VMEM accumulator
    # (pl.when zero-init at k==0, cast+store at k==last) instead of holding
    # every layer resident; not needed at these sizes.
    return int(min(max(needed, 32 << 20), cap))


@functools.partial(jax.jit, static_argnames=("tm_max",))
def _mlp_forward(x, ws, bs, *, tm_max=512):
    """Run the whole MLP in ONE pallas_call; returns x.dtype output, true dout."""
    num_layers = len(ws)
    compute_dtype = ws[0].dtype
    lead = x.shape[:-1]
    din = x.shape[-1]
    dout = ws[-1].shape[1]

    x2d = x.reshape((-1, din))
    M = x2d.shape[0]

    # Divisor-aware row tile: minimize last-block waste; force >=2 grid steps
    # for large M so ("parallel",) spreads rows over both v7x TensorCores.
    n_steps = max(pl.cdiv(M, tm_max), 2 if M >= 512 else 1)
    tm = _round_up(pl.cdiv(M, n_steps), _ROW_ALIGN)
    if tm >= M:
        tm = M           # single block == full array dim (always legal)
    grid = (pl.cdiv(M, tm),)

    in_specs = [pl.BlockSpec((tm, din), lambda i: (i, 0))]          # x row tile
    for w in ws:
        in_specs.append(pl.BlockSpec(w.shape, lambda i: (0, 0)))    # resident W
    for b in bs:
        in_specs.append(pl.BlockSpec(b.shape, lambda i: (0, 0)))    # resident b

    kernel = functools.partial(_fused_mlp_kernel,
                               num_layers=num_layers,
                               compute_dtype=compute_dtype)

    out = pl.pallas_call(
        kernel,
        out_shape=jax.ShapeDtypeStruct((M, dout), x.dtype),
        grid_spec=pltpu.PrefetchScalarGridSpec(
            num_scalar_prefetch=0,
            grid=grid,
            in_specs=in_specs,
            # Output written at its true width (no 128 lane-padding, no trim);
            # for a tiny head (e.g. 4) the masked store is cheaper than 32x
            # write amplification + an extra slice op.
            out_specs=pl.BlockSpec((tm, dout), lambda i: (i, 0)),
        ),
        compiler_params=pltpu.CompilerParams(
            dimension_semantics=("parallel",),
            vmem_limit_bytes=_vmem_limit_bytes(ws, bs, tm, din, dout,
                                               x.dtype.itemsize),
        ),
    )(x2d, *ws, *bs)
    return out.reshape(lead + (dout,))


class MLPPallas:
    """Very simple multi-layer perceptron (FFN), matching the PyTorch MLP."""

    def __init__(self, input_dim, hidden_dim, output_dim, num_layers, key,
                 compute_dtype=jnp.bfloat16):
        self.num_layers = num_layers
        self.output_dim = output_dim
        h = [hidden_dim] * (num_layers - 1)
        dims = list(zip([input_dim] + h, h + [output_dim]))

        self.params = []   # unpadded f32 "true" weights (reference)
        ws, bs = [], []    # padded + pre-cast, VMEM-resident in the kernel
        for li, (n, k) in enumerate(dims):
            key, wk, bk = jax.random.split(key, 3)
            bound = 1.0 / (n ** 0.5)          # PyTorch Linear default init range
            w = jax.random.uniform(wk, (n, k), jnp.float32, -bound, bound)
            b = jax.random.uniform(bk, (k,), jnp.float32, -bound, bound)
            self.params.append((w, b))

            # Pad only the *internal* hidden dims to lane multiples: layer-0
            # keeps K = true input_dim (so x needs no feature pad) and the last
            # layer keeps N = true output_dim (so the output needs no trim).
            n_p = n if li == 0 else _round_up(n, _LANE)
            k_p = k if li == num_layers - 1 else _round_up(k, _LANE)
            w_p = jnp.zeros((n_p, k_p), jnp.float32).at[:n, :k].set(w)
            b_p = jnp.zeros((1, k_p), jnp.float32).at[0, :k].set(b)
            ws.append(w_p.astype(compute_dtype))   # pre-cast ONCE to MXU dtype
            bs.append(b_p)                         # biases stay f32
        self.ws = tuple(ws)
        self.bs = tuple(bs)

    def __call__(self, x, tm_max=512):
        return _mlp_forward(x, self.ws, self.bs, tm_max=tm_max)


def _reference_mlp(params, num_layers, x):
    """Plain-JAX f32 reference (matches the PyTorch forward)."""
    y = x
    for i, (w, b) in enumerate(params):
        y = jnp.dot(y, w) + b
        if i < num_layers - 1:
            y = jnp.maximum(y, 0.0)
    return y


if __name__ == "__main__":
    key = jax.random.PRNGKey(0)
    key, xk, pk = jax.random.split(key, 3)

    # Small shapes consistent with ViDT's use of MLP (e.g. the bbox head):
    # batch=2, seq=8 queries, input_dim=hidden_dim=32, output_dim=4, 3 layers.
    batch, seq, input_dim, hidden_dim, output_dim, num_layers = 2, 8, 32, 32, 4, 3
    x = jax.random.normal(xk, (batch, seq, input_dim), jnp.float32)

    # Same key -> identical underlying weights for both compute-dtype variants.
    mlp_f32 = MLPPallas(input_dim, hidden_dim, output_dim, num_layers, pk,
                        compute_dtype=jnp.float32)
    mlp_bf16 = MLPPallas(input_dim, hidden_dim, output_dim, num_layers, pk,
                         compute_dtype=jnp.bfloat16)

    ref = _reference_mlp(mlp_f32.params, num_layers, x)

    # 1) f32 MXU path: tight check against the plain-JAX reference.
    out_f32 = jax.block_until_ready(mlp_f32(x))
    assert out_f32.shape == (batch, seq, output_dim), out_f32.shape
    assert jnp.allclose(out_f32, ref, atol=1e-4, rtol=1e-4), "f32 mismatch vs reference"

    # 2) bf16 MXU path (default; MXU-native on v5e/v6e/v7x): loose check.
    out_bf16 = jax.block_until_ready(mlp_bf16(x))
    assert out_bf16.shape == (batch, seq, output_dim), out_bf16.shape
    assert jnp.allclose(out_bf16, ref, atol=5e-2, rtol=5e-2), "bf16 mismatch vs reference"

    print("KERNEL_OK")
</pallas_src>

<mosaic_0001>
module attributes {stable_mosaic.version = 11 : i64} {
  func.func @_fused_mlp_kernel(%arg0: i32, %arg1: memref<16x32xf32, #tpu.memory_space<vmem>>, %arg2: memref<32x128xf32, #tpu.memory_space<vmem>>, %arg3: memref<128x128xf32, #tpu.memory_space<vmem>>, %arg4: memref<128x4xf32, #tpu.memory_space<vmem>>, %arg5: memref<1x128xf32, #tpu.memory_space<vmem>>, %arg6: memref<1x128xf32, #tpu.memory_space<vmem>>, %arg7: memref<1x4xf32, #tpu.memory_space<vmem>>, %arg8: memref<16x4xf32, #tpu.memory_space<vmem>>) attributes {dimension_semantics = [#tpu.dimension_semantics<parallel>], iteration_bounds = array<i64: 1>, scalar_prefetch = 0 : i64, scratch_operands = 0 : i64, tpu.core_type = #tpu.core_type<tc>, window_params = [{transform_indices = @transform_0, window_bounds = array<i64: 16, 32>}, {pipeline_mode = #tpu.pipeline_mode<synchronous>, transform_indices = @transform_1, window_bounds = array<i64: 32, 128>}, {pipeline_mode = #tpu.pipeline_mode<synchronous>, transform_indices = @transform_2, window_bounds = array<i64: 128, 128>}, {pipeline_mode = #tpu.pipeline_mode<synchronous>, transform_indices = @transform_3, window_bounds = array<i64: 128, 4>}, {pipeline_mode = #tpu.pipeline_mode<synchronous>, transform_indices = @transform_4, window_bounds = array<i64: 1, 128>}, {pipeline_mode = #tpu.pipeline_mode<synchronous>, transform_indices = @transform_5, window_bounds = array<i64: 1, 128>}, {pipeline_mode = #tpu.pipeline_mode<synchronous>, transform_indices = @transform_6, window_bounds = array<i64: 1, 4>}, {transform_indices = @transform_7, window_bounds = array<i64: 16, 4>}]} {
    %c0 = arith.constant 0 : index
    %c0_0 = arith.constant 0 : index
    %0 = vector.load %arg1[%c0, %c0_0] : memref<16x32xf32, #tpu.memory_space<vmem>>, vector<16x32xf32>
    %c0_1 = arith.constant 0 : index
    %c0_2 = arith.constant 0 : index
    %1 = vector.load %arg2[%c0_1, %c0_2] : memref<32x128xf32, #tpu.memory_space<vmem>>, vector<32x128xf32>
    %cst = arith.constant dense<0.000000e+00> : vector<16x128xf32>
    %2 = tpu.matmul %0, %1, %cst {dimension_numbers = #tpu.dot_dimension_numbers<[1], [0], [0], [1], [0, 0, 1, 1], [], []>} : vector<16x32xf32>, vector<32x128xf32>, vector<16x128xf32> -> vector<16x128xf32>
    %c0_3 = arith.constant 0 : index
    %c0_4 = arith.constant 0 : index
    %3 = vector.load %arg5[%c0_3, %c0_4] : memref<1x128xf32, #tpu.memory_space<vmem>>, vector<1x128xf32>
    %4 = vector.broadcast %3 : vector<1x128xf32> to vector<16x128xf32>
    %5 = arith.addf %2, %4 : vector<16x128xf32>
    %cst_5 = arith.constant 0.000000e+00 : f32
    %6 = vector.broadcast %cst_5 : f32 to vector<16x128xf32>
    %7 = arith.maximumf %5, %6 : vector<16x128xf32>
    %c0_6 = arith.constant 0 : index
    %c0_7 = arith.constant 0 : index
    %8 = vector.load %arg3[%c0_6, %c0_7] : memref<128x128xf32, #tpu.memory_space<vmem>>, vector<128x128xf32>
    %cst_8 = arith.constant dense<0.000000e+00> : vector<16x128xf32>
    %9 = tpu.matmul %7, %8, %cst_8 {dimension_numbers = #tpu.dot_dimension_numbers<[1], [0], [0], [1], [0, 0, 1, 1], [], []>} : vector<16x128xf32>, vector<128x128xf32>, vector<16x128xf32> -> vector<16x128xf32>
    %c0_9 = arith.constant 0 : index
    %c0_10 = arith.constant 0 : index
    %10 = vector.load %arg6[%c0_9, %c0_10] : memref<1x128xf32, #tpu.memory_space<vmem>>, vector<1x128xf32>
    %11 = vector.broadcast %10 : vector<1x128xf32> to vector<16x128xf32>
    %12 = arith.addf %9, %11 : vector<16x128xf32>
    %cst_11 = arith.constant 0.000000e+00 : f32
    %13 = vector.broadcast %cst_11 : f32 to vector<16x128xf32>
    %14 = arith.maximumf %12, %13 : vector<16x128xf32>
    %c0_12 = arith.constant 0 : index
    %c0_13 = arith.constant 0 : index
    %15 = vector.load %arg4[%c0_12, %c0_13] : memref<128x4xf32, #tpu.memory_space<vmem>>, vector<128x4xf32>
    %cst_14 = arith.constant dense<0.000000e+00> : vector<16x4xf32>
    %16 = tpu.matmul %14, %15, %cst_14 {dimension_numbers = #tpu.dot_dimension_numbers<[1], [0], [0], [1], [0, 0, 1, 1], [], []>} : vector<16x128xf32>, vector<128x4xf32>, vector<16x4xf32> -> vector<16x4xf32>
    %c0_15 = arith.constant 0 : index
    %c0_16 = arith.constant 0 : index
    %17 = vector.load %arg7[%c0_15, %c0_16] : memref<1x4xf32, #tpu.memory_space<vmem>>, vector<1x4xf32>
    %18 = vector.broadcast %17 : vector<1x4xf32> to vector<16x4xf32>
    %19 = arith.addf %16, %18 : vector<16x4xf32>
    %c0_17 = arith.constant 0 : index
    %c0_18 = arith.constant 0 : index
    %20 = vector.load %arg8[%c0_17, %c0_18] : memref<16x4xf32, #tpu.memory_space<vmem>>, vector<16x4xf32>
    tpu.vector_store %arg8[%c0_17, %c0_18], %19 {strides = array<i32>} : memref<16x4xf32, #tpu.memory_space<vmem>>, vector<16x4xf32>,
    return
  }
  func.func @transform_0(%arg0: i32) -> (i32, i32) {
    %c0_i32 = arith.constant 0 : i32
    %c0_i32_0 = arith.constant 0 : i32
    return %arg0, %c0_i32 : i32, i32
  }
  func.func @transform_1(%arg0: i32) -> (i32, i32) {
    %c0_i32 = arith.constant 0 : i32
    %c0_i32_0 = arith.constant 0 : i32
    %c0_i32_1 = arith.constant 0 : i32
    return %c0_i32, %c0_i32_0 : i32, i32
  }
  func.func @transform_2(%arg0: i32) -> (i32, i32) {
    %c0_i32 = arith.constant 0 : i32
    %c0_i32_0 = arith.constant 0 : i32
    %c0_i32_1 = arith.constant 0 : i32
    return %c0_i32, %c0_i32_0 : i32, i32
  }
  func.func @transform_3(%arg0: i32) -> (i32, i32) {
    %c0_i32 = arith.constant 0 : i32
    %c0_i32_0 = arith.constant 0 : i32
    %c0_i32_1 = arith.constant 0 : i32
    return %c0_i32, %c0_i32_0 : i32, i32
  }
  func.func @transform_4(%arg0: i32) -> (i32, i32) {
    %c0_i32 = arith.constant 0 : i32
    %c0_i32_0 = arith.constant 0 : i32
    %c0_i32_1 = arith.constant 0 : i32
    return %c0_i32, %c0_i32_0 : i32, i32
  }
  func.func @transform_5(%arg0: i32) -> (i32, i32) {
    %c0_i32 = arith.constant 0 : i32
    %c0_i32_0 = arith.constant 0 : i32
    %c0_i32_1 = arith.constant 0 : i32
    return %c0_i32, %c0_i32_0 : i32, i32
  }
  func.func @transform_6(%arg0: i32) -> (i32, i32) {
    %c0_i32 = arith.constant 0 : i32
    %c0_i32_0 = arith.constant 0 : i32
    %c0_i32_1 = arith.constant 0 : i32
    return %c0_i32, %c0_i32_0 : i32, i32
  }
  func.func @transform_7(%arg0: i32) -> (i32, i32) {
    %c0_i32 = arith.constant 0 : i32
    %c0_i32_0 = arith.constant 0 : i32
    return %arg0, %c0_i32 : i32, i32
  }
}

</mosaic_0001>

<bundles_post_ra>
// kernel: _mlp_forward.1
= control target key start
LH: loop header
LB: loop body
LE: loop exit
PB: predicated region body
PF: predicated region fallthrough
CT: control target
= control target key end

     0   :  { %12 = vsyncpa [#allocation3], 0  ;;  %s791_s0 = inlined_call_operand.hbm [shape: f32[16,32], index: 0, kind: input, shape index: {}]   ;;  %s792_s1 = inlined_call_operand.hbm [shape: f32[32,128], index: 1, kind: input, shape index: {}]   ;;  %s793_s2 = inlined_call_operand.vmem [shape: f32[128,128], index: 2, kind: input, shape index: {}]   ;;  %s794_s3 = inlined_call_operand.vmem [shape: f32[128,4], index: 3, kind: input, shape index: {}]   ;;  %s795_s4 = inlined_call_operand.vmem [shape: f32[1,128], index: 4, kind: input, shape index: {}]   ;;  %s796_s5 = inlined_call_operand.vmem [shape: f32[1,128], index: 5, kind: input, shape index: {}]   ;;  %s797_s6 = inlined_call_operand.vmem [shape: f32[1,4], index: 6, kind: input, shape index: {}]   ;;  %s798_s7 = inlined_call_operand.vmem [shape: f32[16,4], index: 7, kind: output, shape index: {}]  }
   0x1   :  { %13 = vsyncpa [#allocation5], 0  ;;  %s610_s24 = smov [#allocation2]   ;;  %s562_s28 = scalar_lea.hbm %s791_s0, 256 }
   0x2   :  { %s19_s25 = sshll.u32 %s610_s24, 4  ;;  %p563_p0 = scmp.ne.s32.totalorder %s791_s0, %s562_s28  ;;  %s20_s25 = int_to_ptr.vmem [resolvable:$true] %s19_s25 }
   0x3   :  { %p566_p1 = scmp.lt.u32.totalorder %s562_s28, %s791_s0 }
   0x5   :  { %p568_p2 = pnand %p566_p1, %p563_p0 }
   0x7   :  { %571 = shalt.err (!%p568_p2)
}
   0x8   :  { %s572_s10 = scalar_lea.vmem %s20_s25, 256  ;;  %p577_p4 = scmp.lt.s32.totalorder %s20_s25, %s20_s25 }
   0x9   :  { %p573_p3 = scmp.ne.s32.totalorder %s20_s25, %s572_s10  ;;  %p578_p5 = scmp.lt.s32.totalorder %s572_s10, %s572_s10 }
   0xb   :  { %p579_p6 = por %p578_p5, %p577_p4 }
   0xd   :  { %p580_p7 = pnand %p579_p6, %p573_p3 }
   0xf   :  { %583 = shalt.err (!%p580_p7)
}
  0x10   :  { %s611_s11 = smov 128   ;;  %s612_s12 = smov 8  }
  0x11   :  { %25 = dma.hbm_to_vmem [thread:$0]  %s791_s0, 256, %s20_s25, [#allocation3], %s611_s11, %s611_s11, %s612_s12  }
  0x12   :  { %s613_s15 = smov [#allocation4]   ;;  %s584_s19 = scalar_lea.hbm %s792_s1, 512 }
  0x13   :  { %s31_s16 = sshll.u32 %s613_s15, 4  ;;  %p585_p8 = scmp.ne.s32.totalorder %s792_s1, %s584_s19  ;;  %s32_s16 = int_to_ptr.vmem [resolvable:$true] %s31_s16 }
  0x14   :  { %p588_p9 = scmp.lt.u32.totalorder %s584_s19, %s792_s1 }
  0x16   :  { %p590_p10 = pnand %p588_p9, %p585_p8 }
  0x18   :  { %593 = shalt.err (!%p590_p10)
}
  0x19   :  { %s594_s24 = scalar_lea.vmem %s32_s16, 512  ;;  %p599_p12 = scmp.lt.s32.totalorder %s32_s16, %s32_s16 }
  0x1a   :  { %p595_p11 = scmp.ne.s32.totalorder %s32_s16, %s594_s24  ;;  %p600_p13 = scmp.lt.s32.totalorder %s594_s24, %s594_s24 }
  0x1c   :  { %p601_p0 = por %p600_p13, %p599_p12 }
  0x1e   :  { %p602_p1 = pnand %p601_p0, %p595_p11 }
  0x20   :  { %605 = shalt.err (!%p602_p1)
}
  0x21   :  { %37 = dma.hbm_to_vmem [thread:$0]  %s792_s1, 512, %s32_s16, [#allocation5], %s611_s11, %s611_s11, %s612_s12  }
  0x22   :  { %606 = dma.done.wait [#allocation3], 256  }
  0x23   :  { %607 = vsyncadd [#allocation3], 4294967040 }
  0x24   :  { %608 = dma.done.wait [#allocation5], 512  }
  0x25   :  { %609 = vsyncadd [#allocation5], 4294966784  ;;  %vm67_vm0 = vcmask 261120   ;;  %v56_v0 = vld [vmem:[#allocation4] sm:$0xff]  ;;  %v57_v1 = vld [vmem:[#allocation4 + $0x8] sm:$0xff]  ;;  %vm349_vm1 = vcmask 31744  }
  0x26   :  { %v58_v2 = vld [vmem:[#allocation4 + $0x10] sm:$0xff]  ;;  %v486_v3 = vpack.c.bf16 %v57_v1, %v56_v0  ;;  %v59_v4 = vld [vmem:[#allocation4 + $0x18] sm:$0xff]  ;;  %v153_v9 = vld [vmem:[%s793_s2 + $0x10] sm:$0xff] }
  0x27   :  { %v54_v5 = vld [vmem:[#allocation2] sm:$0xff]  ;;  %v490_v6 = vpack.c.bf16 %v59_v4, %v58_v2  ;;  %v152_v8 = vld [vmem:[%s793_s2 + $0x8] sm:$0xff]  ;;  %v154_v11 = vld [vmem:[%s793_s2 + $0x18] sm:$0xff] }
  0x28   :  { %413 = vmatprep.mubr.msk.f32.mxu0 %vm67_vm0, %v54_v5  ;;  %v151_v7 = vld [vmem:[%s793_s2] sm:$0xff]  ;;  %487 = vmatprep.subr.bf16.mxu0 %v486_v3  ;;  %v498_v12 = vpack.c.bf16 %v154_v11, %v153_v9  ;;  %v156_v14 = vld [vmem:[%s793_s2 + $0x28] sm:$0xff]  ;;  %v157_v17 = vld [vmem:[%s793_s2 + $0x30] sm:$0xff] }
  0x29   :  { %v494_v10 = vpack.c.bf16 %v152_v8, %v151_v7  ;;  %489 = vmatpush3.bf16.msra.mxu0 %v486_v3  ;;  %v155_v13 = vld [vmem:[%s793_s2 + $0x20] sm:$0xff]  ;;  %v55_v16 = vld [vmem:[#allocation2 + $0x8] sm:$0xff]  ;;  %v158_v18 = vld [vmem:[%s793_s2 + $0x38] sm:$0xff] }
  0x2a   :  { %491 = vmatprep.subr.bf16.mxu0 %v490_v6  ;;  %v502_v15 = vpack.c.bf16 %v156_v14, %v155_v13  ;;  %v506_v19 = vpack.c.bf16 %v158_v18, %v157_v17  ;;  %v159_v20 = vld [vmem:[%s793_s2 + $0x40] sm:$0xff]  ;;  %v160_v21 = vld [vmem:[%s793_s2 + $0x48] sm:$0xff]  ;;  %v161_v23 = vld [vmem:[%s793_s2 + $0x50] sm:$0xff] }
  0x2b   :  { %495 = vmatprep.subr.bf16.mxu1 %v494_v10  ;;  %v510_v22 = vpack.c.bf16 %v160_v21, %v159_v20  ;;  %v162_v24 = vld [vmem:[%s793_s2 + $0x58] sm:$0xff]  ;;  %v163_v26 = vld [vmem:[%s793_s2 + $0x60] sm:$0xff]  ;;  %v164_v27 = vld [vmem:[%s793_s2 + $0x68] sm:$0xff] }
  0x2c   :  { %497 = vmatpush3.bf16.msra.mxu1 %v494_v10  ;;  %v514_v25 = vpack.c.bf16 %v162_v24, %v161_v23  ;;  %v518_v28 = vpack.c.bf16 %v164_v27, %v163_v26  ;;  %v165_v29 = vld [vmem:[%s793_s2 + $0x70] sm:$0xff]  ;;  %v166_v30 = vld [vmem:[%s793_s2 + $0x78] sm:$0xff]  ;;  %v251_v32 = vld [vmem:[%s794_s3] sm:$0xff] }
  0x2d   :  { %499 = vmatprep.subr.bf16.mxu1 %v498_v12  ;;  %493 = vmatpush3.bf16.msra.mxu0 %v490_v6  ;;  %v522_v31 = vpack.c.bf16 %v166_v30, %v165_v29  ;;  %v252_v33 = vld [vmem:[%s794_s3 + $0x8] sm:$0xff]  ;;  %v253_v34 = vld [vmem:[%s794_s3 + $0x10] sm:$0xff]  ;;  %v254_v36 = vld [vmem:[%s794_s3 + $0x18] sm:$0xff] }
  0x2e   :  { %v526_v35 = vpack.c.bf16 %v252_v33, %v251_v32  ;;  %v530_v37 = vpack.c.bf16 %v254_v36, %v253_v34  ;;  %v255_v38 = vld [vmem:[%s794_s3 + $0x20] sm:$0xff]  ;;  %v256_v39 = vld [vmem:[%s794_s3 + $0x28] sm:$0xff]  ;;  %v257_v41 = vld [vmem:[%s794_s3 + $0x30] sm:$0xff] }
  0x2f   :  { %v534_v40 = vpack.c.bf16 %v256_v39, %v255_v38  ;;  %v258_v42 = vld [vmem:[%s794_s3 + $0x38] sm:$0xff]  ;;  %v259_v44 = vld [vmem:[%s794_s3 + $0x40] sm:$0xff]  ;;  %v260_v45 = vld [vmem:[%s794_s3 + $0x48] sm:$0xff] }
  0x30   :  { %501 = vmatpush3.bf16.msra.mxu1 %v498_v12  ;;  %414 = vmatmul.mubr.msk.f32.vlgmr.msra.gmra.mrb[0].mxu0 %vm67_vm0, %v55_v16  ;;  %v538_v43 = vpack.c.bf16 %v258_v42, %v257_v41  ;;  %v542_v46 = vpack.c.bf16 %v260_v45, %v259_v44  ;;  %v261_v47 = vld [vmem:[%s794_s3 + $0x50] sm:$0xff]  ;;  %v262_v48 = vld [vmem:[%s794_s3 + $0x58] sm:$0xff]  ;;  %v263_v50 = vld [vmem:[%s794_s3 + $0x60] sm:$0xff] }
  0x31   :  { %503 = vmatprep.subr.bf16.mxu1 %v502_v15  ;;  %527 = vmatprep.subr.bf16.mxu0 %v526_v35  ;;  %v546_v49 = vpack.c.bf16 %v262_v48, %v261_v47  ;;  %v264_v51 = vld [vmem:[%s794_s3 + $0x68] sm:$0xff]  ;;  %v358_v53 = vld [vmem:[%s795_s4] ss:$0 sm:$0xff]  ;;  %v265_v60 = vld [vmem:[%s794_s3 + $0x70] sm:$0xff] }
  0x32   :  { %529 = vmatpush3.bf16.msra.mxu0 %v526_v35  ;;  %v550_v52 = vpack.c.bf16 %v264_v51, %v263_v50  ;;  %v266_v61 = vld [vmem:[%s794_s3 + $0x78] sm:$0xff]  ;;  %v361_v63 = vld [vmem:[%s796_s5] ss:$0 sm:$0xff] }
  0x33   :  { %531 = vmatprep.subr.bf16.mxu0 %v530_v37  ;;  %v554_v62 = vpack.c.bf16 %v266_v61, %v265_v60  ;;  %v362_v6 = vld [vmem:[%s797_s6] ss:$0 sm:$0xff] }
  0x34   :  { %505 = vmatpush3.bf16.msra.mxu1 %v502_v15 }
  0x35   :  { %507 = vmatprep.subr.bf16.mxu1 %v506_v19 }
  0x36   :  { %533 = vmatpush3.bf16.msra.mxu0 %v530_v37 }
  0x37   :  { %535 = vmatprep.subr.bf16.mxu0 %v534_v40 }
  0x38   :  { %509 = vmatpush3.bf16.msra.mxu1 %v506_v19 }
  0x39   :  { %511 = vmatprep.subr.bf16.mxu1 %v510_v22 }
  0x3a   :  { %537 = vmatpush3.bf16.msra.mxu0 %v534_v40 }
  0x3b   :  { %539 = vmatprep.subr.bf16.mxu0 %v538_v43 }
  0x3c   :  { %513 = vmatpush3.bf16.msra.mxu1 %v510_v22 }
  0x3d   :  { %515 = vmatprep.subr.bf16.mxu1 %v514_v25 }
  0x3e   :  { %541 = vmatpush3.bf16.msra.mxu0 %v538_v43 }
  0x3f   :  { %543 = vmatprep.subr.bf16.mxu0 %v542_v46 }
  0x40   :  { %517 = vmatpush3.bf16.msra.mxu1 %v514_v25 }
  0x41   :  { %519 = vmatprep.subr.bf16.mxu1 %v518_v28 }
  0x42   :  { %545 = vmatpush3.bf16.msra.mxu0 %v542_v46 }
  0x43   :  { %547 = vmatprep.subr.bf16.mxu0 %v546_v49 }
  0x44   :  { %521 = vmatpush3.bf16.msra.mxu1 %v518_v28 }
  0x45   :  { %523 = vmatprep.subr.bf16.mxu1 %v522_v31 }
  0x46   :  { %549 = vmatpush3.bf16.msra.mxu0 %v546_v49 }
  0x47   :  { %551 = vmatprep.subr.bf16.mxu0 %v550_v52 }
  0x48   :  { %525 = vmatpush3.bf16.msra.mxu1 %v522_v31 }
  0x4a   :  { %553 = vmatpush3.bf16.msra.mxu0 %v550_v52 }
  0x4b   :  { %555 = vmatprep.subr.bf16.mxu0 %v554_v62 }
  0x4e   :  { %557 = vmatpush3.bf16.msra.mxu0 %v554_v62 }
 0x103   :  { %v415_v54 = vpop.f32.mrb[0].mxu0 }
 0x104   :  { %v146_v55 = vadd.f32 %v415_v54, %v358_v53  ;;  %v140_v56 = vpop.f32.mrb[1].mxu0 }
 0x105   :  { %v141_v57 = vadd.f32 %v358_v53, %v140_v56 }
 0x106   :  { %v150_v59 = vmax.f32 %v146_v55, 0.0 }
 0x107   :  { %v149_v58 = vmax.f32 %v141_v57, 0.0 }
 0x109   :  { %448 = vmatprep.mubr.f32.mxu1 %v149_v58 }
 0x10a   :  { %449 = vmatmul.mubr.f32.vlgmr.msra.gmra.mrb[0].mxu1 %v150_v59 }
 0x1dd   :  { %v450_v0 = vpop.f32.mrb[0].mxu1 }
 0x1de   :  { %v246_v1 = vadd.f32 %v450_v0, %v361_v63  ;;  %v240_v2 = vpop.f32.mrb[1].mxu1 }
 0x1df   :  { %v241_v3 = vadd.f32 %v361_v63, %v240_v2 }
 0x1e0   :  { %v250_v5 = vmax.f32 %v246_v1, 0.0 }
 0x1e1   :  { %v249_v4 = vmax.f32 %v241_v3, 0.0 }
 0x1e3   :  { %483 = vmatprep.mubr.f32.mxu0 %v249_v4 }
 0x1e4   :  { %484 = vmatmul.mubr.f32.vlgmr.msra.gmra.mrb[2].mxu0 %v250_v5 }
 0x2b7   :  { %v485_v7 = vpop.f32.mrb[2].mxu0 }
 0x2b8   :  { %v346_v8 = vadd.f32 %v485_v7, %v362_v6  ;;  %v340_v9 = vpop.f32.mrb[3].mxu0 }
 0x2b9   :  { %v341_v10 = vadd.f32 %v362_v6, %v340_v9 }
 0x2ba   :  { %351 = vst.msk [vmem:[%s798_s7 + $0x8] sm:$0xff] %vm349_vm1, %v346_v8 }
 0x2bb   :  { %350 = vst.msk [vmem:[%s798_s7] sm:$0xff] %vm349_vm1, %v341_v10 }
 0x2bc   :  { %356 = vsyncpa [#allocation3], 1 }
 0x2bd   :  { %357 = vsyncpa [#allocation5], 1 }

</bundles_post_ra>
